<compile_context>
chip_gen: v6e
topology: v6e:2x2x1
jax: 0.10.0
libtpu: 0.0.40
codegen_flags: <defaults>
</compile_context>

<pallas_src>
import functools

import jax
import jax.numpy as jnp
import numpy as np
from jax.experimental import pallas as pl
from jax.experimental.pallas import tpu as pltpu

IN_F = 4096
H1 = 128
H2 = 64
OUT_F = 40
OUT_PAD = 128            # lane-dense padded output width (multiple of 128)
MAX_BM = 512             # max batch rows per grid step (caps VMEM growth)
VMEM_LIMIT = 48 * 1024 * 1024   # explicit scoped-VMEM budget (fits v7x 64 MiB)


def _round_up(x, m):
    return ((x + m - 1) // m) * m


def _choose_bm(batch):
    """Batch tile: sublane-aligned, >=2 grid steps when possible, capped at MAX_BM."""
    return min(MAX_BM, max(8, _round_up(pl.cdiv(batch, 2), 8)))


def _mlp_kernel(x_ref, w1_ref, b1_ref, w2_ref, b2_ref, w3_ref, b3_ref, out_ref):
    # Cast f32 activations to bf16 in-kernel (VPU has huge slack; avoids a
    # separate wrapper cast pass over HBM).
    x = x_ref[...].astype(jnp.bfloat16)

    # Linear(4096 -> 128): bf16 operands on the MXU, f32 accumulation.
    h = jnp.dot(x, w1_ref[...], preferred_element_type=jnp.float32) + b1_ref[...]

    # Sigmoid: exp on the EUP; denominator as approximate reciprocal (EUP slot).
    s = pl.reciprocal(1.0 + jnp.exp(-h), approx=True)

    # Linear(128 -> 64) + ReLU.
    h2 = jnp.dot(s.astype(jnp.bfloat16), w2_ref[...],
                 preferred_element_type=jnp.float32) + b2_ref[...]
    h2 = jnp.maximum(h2, 0.0)

    # Dropout(0.2): identity at inference.

    # Linear(64 -> 40) into a zero-padded, lane-dense [*, 128] block.
    out = jnp.dot(h2.astype(jnp.bfloat16), w3_ref[...],
                  preferred_element_type=jnp.float32) + b3_ref[...]
    out_ref[...] = out.astype(out_ref.dtype)


def prepare_params(w1, b1, w2, b2, w3, b3):
    """One-time weight preparation (bf16 casts + lane padding). Run at load time,
    NOT inside the per-call forward path."""
    w1b = jnp.asarray(w1, jnp.bfloat16)
    w2b = jnp.asarray(w2, jnp.bfloat16)
    w3p = jnp.zeros((H2, OUT_PAD), jnp.bfloat16).at[:, :OUT_F].set(
        jnp.asarray(w3, jnp.bfloat16))
    b1f = jnp.asarray(b1, jnp.float32).reshape(1, H1)
    b2f = jnp.asarray(b2, jnp.float32).reshape(1, H2)
    b3p = jnp.zeros((1, OUT_PAD), jnp.float32).at[0, :OUT_F].set(
        jnp.asarray(b3, jnp.float32).reshape(-1))
    return (w1b, b1f, w2b, b2f, w3p, b3p)


@jax.jit
def _forward_impl(x, w1b, b1, w2b, b2, w3p, b3p):
    B = x.shape[0]
    assert x.shape[1] == IN_F
    bm = _choose_bm(B)
    n_steps = pl.cdiv(B, bm)
    Bp = n_steps * bm

    xp = x.astype(jnp.float32)
    if Bp != B:                       # ragged batch: zero-pad rows (masked off below)
        xp = jnp.pad(xp, ((0, Bp - B), (0, 0)))

    full = lambda shape: pl.BlockSpec(shape, lambda i: (0, 0))

    out_padded = pl.pallas_call(
        _mlp_kernel,
        out_shape=jax.ShapeDtypeStruct((Bp, OUT_PAD), jnp.float32),
        grid_spec=pltpu.PrefetchScalarGridSpec(
            num_scalar_prefetch=0,
            grid=(n_steps,),
            in_specs=[
                pl.BlockSpec((bm, IN_F), lambda i: (i, 0)),   # x rows (f32)
                full((IN_F, H1)),                             # W1 (bf16, resident)
                full((1, H1)),                                # b1 (f32)
                full((H1, H2)),                               # W2 (bf16)
                full((1, H2)),                                # b2 (f32)
                full((H2, OUT_PAD)),                          # W3 padded (bf16)
                full((1, OUT_PAD)),                           # b3 padded (f32)
            ],
            out_specs=pl.BlockSpec((bm, OUT_PAD), lambda i: (i, 0)),
        ),
        compiler_params=pltpu.CompilerParams(
            dimension_semantics=("parallel",),
            vmem_limit_bytes=VMEM_LIMIT,
        ),
    )(xp, w1b, b1, w2b, b2, w3p, b3p)

    # Slice back to the true (B, 40) output.  Consumers that can accept the
    # padded lane-dense block could skip this slice entirely.
    return out_padded[:B, :OUT_F]


def model_forward(x, prepared_params):
    return _forward_impl(x, *prepared_params)


def _reference(x, w1, b1, w2, b2, w3, b3):
    # Pure-JAX reference mirroring the kernel's bf16 operand precision
    # (f32 accumulation), dropout in inference mode (identity).
    h = jnp.dot(x.astype(jnp.bfloat16), w1.astype(jnp.bfloat16),
                preferred_element_type=jnp.float32) + b1
    s = jax.nn.sigmoid(h)
    h2 = jnp.dot(s.astype(jnp.bfloat16), w2.astype(jnp.bfloat16),
                 preferred_element_type=jnp.float32) + b2
    h2 = jnp.maximum(h2, 0.0)
    return jnp.dot(h2.astype(jnp.bfloat16), w3.astype(jnp.bfloat16),
                   preferred_element_type=jnp.float32) + b3


if __name__ == "__main__":
    key = jax.random.PRNGKey(0)
    keys = jax.random.split(key, 7)

    B = 8  # small batch

    # Deterministic parameter init (PyTorch-style uniform(-1/sqrt(fan_in), +)).
    def linear_init(kw, kb, fan_in, fan_out):
        bound = 1.0 / np.sqrt(fan_in)
        w = jax.random.uniform(kw, (fan_in, fan_out), jnp.float32, -bound, bound)
        b = jax.random.uniform(kb, (1, fan_out), jnp.float32, -bound, bound)
        return w, b

    x = jax.random.normal(keys[0], (B, IN_F), jnp.float32)
    w1, b1 = linear_init(keys[1], keys[2], IN_F, H1)
    w2, b2 = linear_init(keys[3], keys[4], H1, H2)
    w3, b3 = linear_init(keys[5], keys[6], H2, OUT_F)

    # One-time weight prep (outside the per-call forward path).
    params = prepare_params(w1, b1, w2, b2, w3, b3)

    out = model_forward(x, params)
    out = jax.block_until_ready(out)

    ref = _reference(x, w1, b1, w2, b2, w3, b3)
    np.testing.assert_allclose(np.asarray(out), np.asarray(ref),
                               rtol=2e-2, atol=2e-2)
    print("KERNEL_OK")
</pallas_src>

<mosaic_0001>
module attributes {stable_mosaic.version = 11 : i64} {
  func.func @_mlp_kernel(%arg0: i32, %arg1: memref<8x4096xf32, #tpu.memory_space<vmem>>, %arg2: memref<4096x128xbf16, #tpu.memory_space<vmem>>, %arg3: memref<1x128xf32, #tpu.memory_space<vmem>>, %arg4: memref<128x64xbf16, #tpu.memory_space<vmem>>, %arg5: memref<1x64xf32, #tpu.memory_space<vmem>>, %arg6: memref<64x128xbf16, #tpu.memory_space<vmem>>, %arg7: memref<1x128xf32, #tpu.memory_space<vmem>>, %arg8: memref<8x128xf32, #tpu.memory_space<vmem>>) attributes {dimension_semantics = [#tpu.dimension_semantics<parallel>], iteration_bounds = array<i64: 1>, scalar_prefetch = 0 : i64, scratch_operands = 0 : i64, tpu.core_type = #tpu.core_type<tc>, window_params = [{transform_indices = @transform_0, window_bounds = array<i64: 8, 4096>}, {pipeline_mode = #tpu.pipeline_mode<synchronous>, transform_indices = @transform_1, window_bounds = array<i64: 4096, 128>}, {pipeline_mode = #tpu.pipeline_mode<synchronous>, transform_indices = @transform_2, window_bounds = array<i64: 1, 128>}, {pipeline_mode = #tpu.pipeline_mode<synchronous>, transform_indices = @transform_3, window_bounds = array<i64: 128, 64>}, {pipeline_mode = #tpu.pipeline_mode<synchronous>, transform_indices = @transform_4, window_bounds = array<i64: 1, 64>}, {pipeline_mode = #tpu.pipeline_mode<synchronous>, transform_indices = @transform_5, window_bounds = array<i64: 64, 128>}, {pipeline_mode = #tpu.pipeline_mode<synchronous>, transform_indices = @transform_6, window_bounds = array<i64: 1, 128>}, {transform_indices = @transform_7, window_bounds = array<i64: 8, 128>}]} {
    %c0 = arith.constant 0 : index
    %c0_0 = arith.constant 0 : index
    %0 = vector.load %arg1[%c0, %c0_0] : memref<8x4096xf32, #tpu.memory_space<vmem>>, vector<8x4096xf32>
    %1 = arith.truncf %0 : vector<8x4096xf32> to vector<8x4096xbf16>
    %c0_1 = arith.constant 0 : index
    %c0_2 = arith.constant 0 : index
    %2 = vector.load %arg2[%c0_1, %c0_2] : memref<4096x128xbf16, #tpu.memory_space<vmem>>, vector<4096x128xbf16>
    %cst = arith.constant dense<0.000000e+00> : vector<8x128xf32>
    %3 = tpu.matmul %1, %2, %cst {dimension_numbers = #tpu.dot_dimension_numbers<[1], [0], [0], [1], [0, 0, 1, 1], [], []>} : vector<8x4096xbf16>, vector<4096x128xbf16>, vector<8x128xf32> -> vector<8x128xf32>
    %c0_3 = arith.constant 0 : index
    %c0_4 = arith.constant 0 : index
    %4 = vector.load %arg3[%c0_3, %c0_4] : memref<1x128xf32, #tpu.memory_space<vmem>>, vector<1x128xf32>
    %5 = vector.broadcast %4 : vector<1x128xf32> to vector<8x128xf32>
    %6 = arith.addf %3, %5 : vector<8x128xf32>
    %cst_5 = arith.constant 0.000000e+00 : f32
    %7 = vector.broadcast %cst_5 : f32 to vector<8x128xf32>
    %8 = arith.subf %7, %6 : vector<8x128xf32>
    %9 = math.exp %8 : vector<8x128xf32>
    %cst_6 = arith.constant 1.000000e+00 : f32
    %10 = vector.broadcast %cst_6 : f32 to vector<8x128xf32>
    %11 = arith.addf %10, %9 : vector<8x128xf32>
    %12 = tpu.reciprocal %11 {approx = true} : vector<8x128xf32> -> vector<8x128xf32>
    %13 = arith.truncf %12 : vector<8x128xf32> to vector<8x128xbf16>
    %c0_7 = arith.constant 0 : index
    %c0_8 = arith.constant 0 : index
    %14 = vector.load %arg4[%c0_7, %c0_8] : memref<128x64xbf16, #tpu.memory_space<vmem>>, vector<128x64xbf16>
    %cst_9 = arith.constant dense<0.000000e+00> : vector<8x64xf32>
    %15 = tpu.matmul %13, %14, %cst_9 {dimension_numbers = #tpu.dot_dimension_numbers<[1], [0], [0], [1], [0, 0, 1, 1], [], []>} : vector<8x128xbf16>, vector<128x64xbf16>, vector<8x64xf32> -> vector<8x64xf32>
    %c0_10 = arith.constant 0 : index
    %c0_11 = arith.constant 0 : index
    %16 = vector.load %arg5[%c0_10, %c0_11] : memref<1x64xf32, #tpu.memory_space<vmem>>, vector<1x64xf32>
    %17 = vector.broadcast %16 : vector<1x64xf32> to vector<8x64xf32>
    %18 = arith.addf %15, %17 : vector<8x64xf32>
    %cst_12 = arith.constant 0.000000e+00 : f32
    %19 = vector.broadcast %cst_12 : f32 to vector<8x64xf32>
    %20 = arith.maximumf %18, %19 : vector<8x64xf32>
    %21 = arith.truncf %20 : vector<8x64xf32> to vector<8x64xbf16>
    %c0_13 = arith.constant 0 : index
    %c0_14 = arith.constant 0 : index
    %22 = vector.load %arg6[%c0_13, %c0_14] : memref<64x128xbf16, #tpu.memory_space<vmem>>, vector<64x128xbf16>
    %cst_15 = arith.constant dense<0.000000e+00> : vector<8x128xf32>
    %23 = tpu.matmul %21, %22, %cst_15 {dimension_numbers = #tpu.dot_dimension_numbers<[1], [0], [0], [1], [0, 0, 1, 1], [], []>} : vector<8x64xbf16>, vector<64x128xbf16>, vector<8x128xf32> -> vector<8x128xf32>
    %c0_16 = arith.constant 0 : index
    %c0_17 = arith.constant 0 : index
    %24 = vector.load %arg7[%c0_16, %c0_17] : memref<1x128xf32, #tpu.memory_space<vmem>>, vector<1x128xf32>
    %25 = vector.broadcast %24 : vector<1x128xf32> to vector<8x128xf32>
    %26 = arith.addf %23, %25 : vector<8x128xf32>
    %c0_18 = arith.constant 0 : index
    %c0_19 = arith.constant 0 : index
    %27 = vector.load %arg8[%c0_18, %c0_19] : memref<8x128xf32, #tpu.memory_space<vmem>>, vector<8x128xf32>
    tpu.vector_store %arg8[%c0_18, %c0_19], %26 {strides = array<i32>} : memref<8x128xf32, #tpu.memory_space<vmem>>, vector<8x128xf32>,
    return
  }
  func.func @transform_0(%arg0: i32) -> (i32, i32) {
    %c0_i32 = arith.constant 0 : i32
    %c0_i32_0 = arith.constant 0 : i32
    return %arg0, %c0_i32 : i32, i32
  }
  func.func @transform_1(%arg0: i32) -> (i32, i32) {
    %c0_i32 = arith.constant 0 : i32
    %c0_i32_0 = arith.constant 0 : i32
    %c0_i32_1 = arith.constant 0 : i32
    return %c0_i32, %c0_i32_0 : i32, i32
  }
  func.func @transform_2(%arg0: i32) -> (i32, i32) {
    %c0_i32 = arith.constant 0 : i32
    %c0_i32_0 = arith.constant 0 : i32
    %c0_i32_1 = arith.constant 0 : i32
    return %c0_i32, %c0_i32_0 : i32, i32
  }
  func.func @transform_3(%arg0: i32) -> (i32, i32) {
    %c0_i32 = arith.constant 0 : i32
    %c0_i32_0 = arith.constant 0 : i32
    %c0_i32_1 = arith.constant 0 : i32
    return %c0_i32, %c0_i32_0 : i32, i32
  }
  func.func @transform_4(%arg0: i32) -> (i32, i32) {
    %c0_i32 = arith.constant 0 : i32
    %c0_i32_0 = arith.constant 0 : i32
    %c0_i32_1 = arith.constant 0 : i32
    return %c0_i32, %c0_i32_0 : i32, i32
  }
  func.func @transform_5(%arg0: i32) -> (i32, i32) {
    %c0_i32 = arith.constant 0 : i32
    %c0_i32_0 = arith.constant 0 : i32
    %c0_i32_1 = arith.constant 0 : i32
    return %c0_i32, %c0_i32_0 : i32, i32
  }
  func.func @transform_6(%arg0: i32) -> (i32, i32) {
    %c0_i32 = arith.constant 0 : i32
    %c0_i32_0 = arith.constant 0 : i32
    %c0_i32_1 = arith.constant 0 : i32
    return %c0_i32, %c0_i32_0 : i32, i32
  }
  func.func @transform_7(%arg0: i32) -> (i32, i32) {
    %c0_i32 = arith.constant 0 : i32
    %c0_i32_0 = arith.constant 0 : i32
    return %arg0, %c0_i32 : i32, i32
  }
}

</mosaic_0001>

<bundles_post_ra>
// kernel: _forward_impl.1
= control target key start
LH: loop header
LB: loop body
LE: loop exit
PB: predicated region body
PF: predicated region fallthrough
CT: control target
= control target key end

     0   :  { %12 = vsyncpa [#allocation3], 0  ;;  %s4165_s0 = inlined_call_operand.hbm [shape: f32[8,4096], index: 0, kind: input, shape index: {}]   ;;  %s4166_s1 = inlined_call_operand.hbm [shape: bf16[4096,128], index: 1, kind: input, shape index: {}]   ;;  %s4167_s2 = inlined_call_operand.vmem [shape: f32[1,128], index: 2, kind: input, shape index: {}]   ;;  %s4168_s3 = inlined_call_operand.vmem [shape: bf16[128,64], index: 3, kind: input, shape index: {}]   ;;  %s4169_s4 = inlined_call_operand.vmem [shape: f32[1,64], index: 4, kind: input, shape index: {}]   ;;  %s4170_s5 = inlined_call_operand.vmem [shape: bf16[64,128], index: 5, kind: input, shape index: {}]   ;;  %s4171_s6 = inlined_call_operand.vmem [shape: f32[1,128], index: 6, kind: input, shape index: {}]   ;;  %s4172_s7 = inlined_call_operand.hbm [shape: f32[8,128], index: 7, kind: output, shape index: {}]  }
   0x1   :  { %13 = vsyncpa [#allocation6], 0 }
   0x2   :  { %14 = vsyncpa [#allocation4], 0  ;;  %s4047_s24 = smov [#allocation2]   ;;  %s4048_s26 = smov [#allocation5]  }
   0x3   :  { %s21_s25 = sshll.u32 %s4047_s24, 4  ;;  %s30_s27 = sshll.u32 %s4048_s26, 4  ;;  %s22_s25 = int_to_ptr.vmem [resolvable:$true] %s21_s25  ;;  %s31_s27 = int_to_ptr.vmem [resolvable:$true] %s30_s27 }
   0x4   :  { %s3989_s28 = scalar_lea.vmem %s22_s25, 4096  ;;  %p3994_p1 = scmp.lt.s32.totalorder %s22_s25, %s22_s25 }
   0x5   :  { %p3990_p0 = scmp.ne.s32.totalorder %s22_s25, %s3989_s28  ;;  %p3995_p2 = scmp.lt.s32.totalorder %s3989_s28, %s3989_s28 }
   0x7   :  { %p3996_p3 = por %p3995_p2, %p3994_p1 }
   0x9   :  { %p3997_p4 = pnand %p3996_p3, %p3990_p0 }
   0xb   :  { %4000 = shalt.err (!%p3997_p4)
}
   0xc   :  { %24 = dma.hbm_to_vmem [thread:$0]  %s4165_s0, 4096, %s22_s25, [#allocation3]  }
   0xd   :  { %s4009_s8 = scalar_lea.vmem %s31_s27, 32768  ;;  %p4014_p6 = scmp.lt.s32.totalorder %s31_s27, %s31_s27 }
   0xe   :  { %p4010_p5 = scmp.ne.s32.totalorder %s31_s27, %s4009_s8  ;;  %p4015_p7 = scmp.lt.s32.totalorder %s4009_s8, %s4009_s8 }
  0x10   :  { %p4016_p8 = por %p4015_p7, %p4014_p6 }
  0x12   :  { %p4017_p9 = pnand %p4016_p8, %p4010_p5 }
  0x14   :  { %4020 = shalt.err (!%p4017_p9)
}
  0x15   :  { %s4049_s9 = smov 64   ;;  %s4050_s10 = smov 4  }
  0x16   :  { %36 = dma.hbm_to_vmem [thread:$0]  %s4166_s1, 32768, %s31_s27, [#allocation6], %s4049_s9, %s4049_s9, %s4050_s10  }
  0x17   :  { %4041 = dma.done.wait [#allocation3], 4096  }
  0x18   :  { %4042 = vsyncadd [#allocation3], 4294963200 }
  0x19   :  { %4043 = dma.done.wait [#allocation6], 32768  }
  0x1a   :  { %4044 = vsyncadd [#allocation6], 4294934528  ;;  %v3709_v0 = vld [vmem:[#allocation5 + $0x78] sm:$0xff]   ;;  %v3713_v4 = vld [vmem:[#allocation5 + $0x70] sm:$0xff]   ;;  %vm4052_vm0 = vmmov 0   ;;  %vm2971_vm1 = vcmask 523264  }
  0x1b   :  { %v3710_v1 = vld [vmem:[#allocation5 + $0xf8] sm:$0xff]   ;;  %3304 = vmatprep.subr.bf16.mxu0 %v3709_v0  ;;  %v3714_v5 = vld [vmem:[#allocation5 + $0xf0] sm:$0xff]   ;;  %v3717_v8 = vld [vmem:[#allocation5 + $0x68] sm:$0xff]   ;;  %s4053_s13 = smov [#allocation7]  }
  0x1c   :  { %v3711_v2 = vld [vmem:[#allocation5 + $0x38] sm:$0xff]   ;;  %3326 = vmatprep.subr.bf16.mxu1 %v3710_v1  ;;  %v3715_v6 = vld [vmem:[#allocation5 + $0x30] sm:$0xff]   ;;  %v3718_v9 = vld [vmem:[#allocation5 + $0xe8] sm:$0xff]  }
  0x1d   :  { %v3712_v3 = vld [vmem:[#allocation5 + $0xb8] sm:$0xff]   ;;  %3305 = vmatpush3.bf16.msra.mxu0 %v3711_v2  ;;  %v3716_v7 = vld [vmem:[#allocation5 + $0xb0] sm:$0xff]   ;;  %v3719_v10 = vld [vmem:[#allocation5 + $0x28] sm:$0xff]  }
  0x1e   :  { %3327 = vmatpush3.bf16.msra.mxu1 %v3712_v3  ;;  %3306 = vmatprep.subr.bf16.mxu0 %v3713_v4  ;;  %v3720_v11 = vld [vmem:[#allocation5 + $0xa8] sm:$0xff]   ;;  %v3721_v12 = vld [vmem:[#allocation5 + $0x60] sm:$0xff]   ;;  %v3725_v16 = vld [vmem:[#allocation5 + $0x58] sm:$0xff]  }
  0x1f   :  { %3328 = vmatprep.subr.bf16.mxu1 %v3714_v5  ;;  %v3722_v13 = vld [vmem:[#allocation5 + $0xe0] sm:$0xff]   ;;  %v3726_v17 = vld [vmem:[#allocation5 + $0xd8] sm:$0xff]   ;;  %v3729_v20 = vld [vmem:[#allocation5 + $0x50] sm:$0xff]  }
  0x20   :  { %v3723_v14 = vld [vmem:[#allocation5 + $0x20] sm:$0xff]   ;;  %v3727_v18 = vld [vmem:[#allocation5 + $0x18] sm:$0xff]   ;;  %v3730_v21 = vld [vmem:[#allocation5 + $0xd0] sm:$0xff]  }
  0x21   :  { %3307 = vmatpush3.bf16.msra.mxu0 %v3715_v6  ;;  %v3724_v15 = vld [vmem:[#allocation5 + $0xa0] sm:$0xff]   ;;  %v3728_v19 = vld [vmem:[#allocation5 + $0x98] sm:$0xff]   ;;  %v3731_v22 = vld [vmem:[#allocation5 + $0x10] sm:$0xff]  }
  0x22   :  { %3329 = vmatpush3.bf16.msra.mxu1 %v3716_v7  ;;  %3308 = vmatprep.subr.bf16.mxu0 %v3717_v8  ;;  %v3732_v23 = vld [vmem:[#allocation5 + $0x90] sm:$0xff]   ;;  %v3733_v24 = vld [vmem:[#allocation5 + $0x48] sm:$0xff]   ;;  %v3737_v28 = vld [vmem:[#allocation5 + $0x40] sm:$0xff]  }
  0x23   :  { %3330 = vmatprep.subr.bf16.mxu1 %v3718_v9  ;;  %v3734_v25 = vld [vmem:[#allocation5 + $0xc8] sm:$0xff]   ;;  %v3738_v29 = vld [vmem:[#allocation5 + $0xc0] sm:$0xff]   ;;  %v57_v33 = vld [vmem:[#allocation2 + $0x18] sm:$0xff] }
  0x24   :  { %v3735_v26 = vld [vmem:[#allocation5 + $0x8] sm:$0xff]   ;;  %v3739_v30 = vld [vmem:[#allocation5] sm:$0xff]   ;;  %v89_v36 = vpack.c.bf16 %v57_v33, %v57_v33  ;;  %v56_v38 = vld [vmem:[#allocation2 + $0x10] sm:$0xff] }
  0x25   :  { %3309 = vmatpush3.bf16.msra.mxu0 %v3719_v10  ;;  %v3736_v27 = vld [vmem:[#allocation5 + $0x88] sm:$0xff]   ;;  %v3740_v31 = vld [vmem:[#allocation5 + $0x80] sm:$0xff]   ;;  %v88_v39 = vpack.c.bf16 %v56_v38, %v56_v38  ;;  %v3741_v40 = vld [vmem:[#allocation5 + $0x178] sm:$0xff]  }
  0x26   :  { %3331 = vmatpush3.bf16.msra.mxu1 %v3720_v11  ;;  %3310 = vmatprep.subr.bf16.mxu0 %v3721_v12  ;;  %v55_v32 = vld [vmem:[#allocation2 + $0x8] sm:$0xff]  ;;  %v54_v34 = vld [vmem:[#allocation2] sm:$0xff]  ;;  %v3742_v41 = vld [vmem:[#allocation5 + $0x1f8] sm:$0xff]  }
  0x27   :  { %3332 = vmatprep.subr.bf16.mxu1 %v3722_v13  ;;  %v87_v35 = vpack.c.bf16 %v55_v32, %v55_v32  ;;  %v86_v37 = vpack.c.bf16 %v54_v34, %v54_v34  ;;  %2245 = vmatprep.mubr.bf16.mxu1 %v89_v36  ;;  %v3743_v42 = vld [vmem:[#allocation5 + $0x138] sm:$0xff]   ;;  %v3745_v44 = vld [vmem:[#allocation5 + $0x170] sm:$0xff]   ;;  %v3749_v48 = vld [vmem:[#allocation5 + $0x168] sm:$0xff]  }
  0x28   :  { %v3744_v43 = vld [vmem:[#allocation5 + $0x1b8] sm:$0xff]   ;;  %v3746_v45 = vld [vmem:[#allocation5 + $0x1f0] sm:$0xff]   ;;  %v3750_v49 = vld [vmem:[#allocation5 + $0x1e8] sm:$0xff]  }
  0x29   :  { %3311 = vmatpush3.bf16.msra.mxu0 %v3723_v14  ;;  %2205 = vmatprep.mubr.bf16.mxu0 %v87_v35  ;;  %v3747_v46 = vld [vmem:[#allocation5 + $0x130] sm:$0xff]   ;;  %v3751_v50 = vld [vmem:[#allocation5 + $0x128] sm:$0xff]   ;;  %v3753_v52 = vld [vmem:[#allocation5 + $0x160] sm:$0xff]  }
  0x2a   :  { %3333 = vmatpush3.bf16.msra.mxu1 %v3724_v15  ;;  %3312 = vmatprep.subr.bf16.mxu0 %v3725_v16  ;;  %v3748_v47 = vld [vmem:[#allocation5 + $0x1b0] sm:$0xff]   ;;  %v3752_v51 = vld [vmem:[#allocation5 + $0x1a8] sm:$0xff]   ;;  %v3754_v53 = vld [vmem:[#allocation5 + $0x1e0] sm:$0xff]  }
  0x2b   :  { %3334 = vmatprep.subr.bf16.mxu1 %v3726_v17  ;;  %v3755_v54 = vld [vmem:[#allocation5 + $0x120] sm:$0xff]   ;;  %v3757_v56 = vld [vmem:[#allocation5 + $0x158] sm:$0xff]   ;;  %v3761_v60 = vld [vmem:[#allocation5 + $0x150] sm:$0xff]  }
  0x2c   :  { %v3756_v55 = vld [vmem:[#allocation5 + $0x1a0] sm:$0xff]   ;;  %v3758_v57 = vld [vmem:[#allocation5 + $0x1d8] sm:$0xff]   ;;  %v3762_v61 = vld [vmem:[#allocation5 + $0x1d0] sm:$0xff]  }
  0x2d   :  { %3313 = vmatpush3.bf16.msra.mxu0 %v3727_v18  ;;  %v3759_v58 = vld [vmem:[#allocation5 + $0x118] sm:$0xff]   ;;  %v3763_v62 = vld [vmem:[#allocation5 + $0x110] sm:$0xff]   ;;  %v3765_v0 = vld [vmem:[#allocation5 + $0x148] sm:$0xff]  }
  0x2e   :  { %3335 = vmatpush3.bf16.msra.mxu1 %v3728_v19  ;;  %3314 = vmatprep.subr.bf16.mxu0 %v3729_v20  ;;  %v3760_v59 = vld [vmem:[#allocation5 + $0x198] sm:$0xff]   ;;  %v3764_v63 = vld [vmem:[#allocation5 + $0x190] sm:$0xff]   ;;  %v3766_v1 = vld [vmem:[#allocation5 + $0x1c8] sm:$0xff]  }
  0x2f   :  { %3336 = vmatprep.subr.bf16.mxu1 %v3730_v21  ;;  %v3767_v2 = vld [vmem:[#allocation5 + $0x108] sm:$0xff]   ;;  %v3769_v4 = vld [vmem:[#allocation5 + $0x140] sm:$0xff]   ;;  %v61_v9 = vld [vmem:[#allocation2 + $0x38] sm:$0xff] }
  0x30   :  { %v3768_v3 = vld [vmem:[#allocation5 + $0x188] sm:$0xff]   ;;  %v3770_v5 = vld [vmem:[#allocation5 + $0x1c0] sm:$0xff]   ;;  %v93_v11 = vpack.c.bf16 %v61_v9, %v61_v9  ;;  %v60_v13 = vld [vmem:[#allocation2 + $0x30] sm:$0xff] }
  0x31   :  { %3315 = vmatpush3.bf16.msra.mxu0 %v3731_v22  ;;  %v3771_v6 = vld [vmem:[#allocation5 + $0x100] sm:$0xff]   ;;  %v59_v8 = vld [vmem:[#allocation2 + $0x28] sm:$0xff]  ;;  %v92_v15 = vpack.c.bf16 %v60_v13, %v60_v13  ;;  %v3773_v16 = vld [vmem:[#allocation5 + $0x278] sm:$0xff]  }
  0x32   :  { %3337 = vmatpush3.bf16.msra.mxu1 %v3732_v23  ;;  %3316 = vmatprep.subr.bf16.mxu0 %v3733_v24  ;;  %v3772_v7 = vld [vmem:[#allocation5 + $0x180] sm:$0xff]   ;;  %v91_v10 = vpack.c.bf16 %v59_v8, %v59_v8  ;;  %v3774_v17 = vld [vmem:[#allocation5 + $0x2f8] sm:$0xff]   ;;  %v3777_v20 = vld [vmem:[#allocation5 + $0x270] sm:$0xff]  }
  0x33   :  { %3338 = vmatprep.subr.bf16.mxu1 %v3734_v25  ;;  %v58_v12 = vld [vmem:[#allocation2 + $0x20] sm:$0xff]  ;;  %v3775_v18 = vld [vmem:[#allocation5 + $0x238] sm:$0xff]   ;;  %v3778_v21 = vld [vmem:[#allocation5 + $0x2f0] sm:$0xff]  }
  0x34   :  { %v90_v14 = vpack.c.bf16 %v58_v12, %v58_v12  ;;  %v3776_v19 = vld [vmem:[#allocation5 + $0x2b8] sm:$0xff]   ;;  %v3779_v22 = vld [vmem:[#allocation5 + $0x230] sm:$0xff]   ;;  %v3781_v24 = vld [vmem:[#allocation5 + $0x268] sm:$0xff]  }
  0x35   :  { %3317 = vmatpush3.bf16.msra.mxu0 %v3735_v26  ;;  %v3780_v23 = vld [vmem:[#allocation5 + $0x2b0] sm:$0xff]   ;;  %v3782_v25 = vld [vmem:[#allocation5 + $0x2e8] sm:$0xff]   ;;  %v3789_v32 = vld [vmem:[#allocation5 + $0x258] sm:$0xff]  }
  0x36   :  { %3339 = vmatpush3.bf16.msra.mxu1 %v3736_v27  ;;  %3318 = vmatprep.subr.bf16.mxu0 %v3737_v28  ;;  %v3783_v26 = vld [vmem:[#allocation5 + $0x228] sm:$0xff]   ;;  %v3785_v28 = vld [vmem:[#allocation5 + $0x260] sm:$0xff]   ;;  %v3790_v33 = vld [vmem:[#allocation5 + $0x2d8] sm:$0xff]  }
  0x37   :  { %3340 = vmatprep.subr.bf16.mxu1 %v3738_v29  ;;  %v3784_v27 = vld [vmem:[#allocation5 + $0x2a8] sm:$0xff]   ;;  %v3786_v29 = vld [vmem:[#allocation5 + $0x2e0] sm:$0xff]   ;;  %v3791_v34 = vld [vmem:[#allocation5 + $0x218] sm:$0xff]  }
  0x38   :  { %v3792_v35 = vld [vmem:[#allocation5 + $0x298] sm:$0xff]   ;;  %v3793_v36 = vld [vmem:[#allocation5 + $0x250] sm:$0xff]  }
  0x39   :  { %3319 = vmatpush3.bf16.msra.mxu0 %v3739_v30  ;;  %v3787_v30 = vld [vmem:[#allocation5 + $0x220] sm:$0xff]   ;;  %v3795_v38 = vld [vmem:[#allocation5 + $0x210] sm:$0xff]   ;;  %v3821_v8 = vld [vmem:[#allocation5 + $0x358] sm:$0xff]  }
  0x3a   :  { %3341 = vmatpush3.bf16.msra.mxu1 %v3740_v31  ;;  %3348 = vmatprep.subr.bf16.mxu0 %v3741_v40  ;;  %v3788_v31 = vld [vmem:[#allocation5 + $0x2a0] sm:$0xff]   ;;  %v3797_v40 = vld [vmem:[#allocation5 + $0x248] sm:$0xff]   ;;  %v3822_v9 = vld [vmem:[#allocation5 + $0x3d8] sm:$0xff]  }
  0x3b   :  { %3370 = vmatprep.subr.bf16.mxu1 %v3742_v41  ;;  %v3798_v41 = vld [vmem:[#allocation5 + $0x2c8] sm:$0xff]   ;;  %v3825_v12 = vld [vmem:[#allocation5 + $0x350] sm:$0xff]  }
  0x3c   :  { %2206 = vmatmul.mubr.bf16.vlgmr.msra.gmra.mxu0 %v86_v37  ;;  %v3794_v37 = vld [vmem:[#allocation5 + $0x2d0] sm:$0xff]  }
  0x3d   :  { %2246 = vmatmul.mubr.bf16.vlgmr.msra.gmra.mxu1 %v88_v39  ;;  %3349 = vmatpush3.bf16.msra.mxu0 %v3743_v42  ;;  %v3796_v39 = vld [vmem:[#allocation5 + $0x290] sm:$0xff]   ;;  %v3799_v42 = vld [vmem:[#allocation5 + $0x208] sm:$0xff]  }
  0x3e   :  { %3371 = vmatpush3.bf16.msra.mxu1 %v3744_v43  ;;  %3350 = vmatprep.subr.bf16.mxu0 %v3745_v44  ;;  %v3800_v43 = vld [vmem:[#allocation5 + $0x288] sm:$0xff]   ;;  %v3801_v44 = vld [vmem:[#allocation5 + $0x240] sm:$0xff]   ;;  %v3826_v13 = vld [vmem:[#allocation5 + $0x3d0] sm:$0xff]  }
  0x3f   :  { %3372 = vmatprep.subr.bf16.mxu1 %v3746_v45  ;;  %2285 = vmatprep.mubr.bf16.mxu0 %v91_v10  ;;  %v3802_v45 = vld [vmem:[#allocation5 + $0x2c0] sm:$0xff]   ;;  %v3823_v10 = vld [vmem:[#allocation5 + $0x318] sm:$0xff]  }
  0x40   :  { %2325 = vmatprep.mubr.bf16.mxu1 %v93_v11  ;;  %v3824_v11 = vld [vmem:[#allocation5 + $0x398] sm:$0xff]  }
  0x41   :  { %3351 = vmatpush3.bf16.msra.mxu0 %v3747_v46  ;;  %v3803_v46 = vld [vmem:[#allocation5 + $0x200] sm:$0xff]  }
  0x42   :  { %3373 = vmatpush3.bf16.msra.mxu1 %v3748_v47  ;;  %3352 = vmatprep.subr.bf16.mxu0 %v3749_v48  ;;  %v3804_v47 = vld [vmem:[#allocation5 + $0x280] sm:$0xff]   ;;  %v63_v48 = vld [vmem:[#allocation2 + $0x48] sm:$0xff] }
  0x43   :  { %3374 = vmatprep.subr.bf16.mxu1 %v3750_v49  ;;  %v95_v49 = vpack.c.bf16 %v63_v48, %v63_v48  ;;  %v3853_v48 = vld [vmem:[#allocation5 + $0x458] sm:$0xff]  }
  0x45   :  { %3353 = vmatpush3.bf16.msra.mxu0 %v3751_v50  ;;  %v65_v50 = vld [vmem:[#allocation2 + $0x58] sm:$0xff] }
  0x46   :  { %3375 = vmatpush3.bf16.msra.mxu1 %v3752_v51  ;;  %3354 = vmatprep.subr.bf16.mxu0 %v3753_v52  ;;  %v62_v51 = vld [vmem:[#allocation2 + $0x40] sm:$0xff]  ;;  %v64_v52 = vld [vmem:[#allocation2 + $0x50] sm:$0xff] }
  0x47   :  { %3376 = vmatprep.subr.bf16.mxu1 %v3754_v53  ;;  %v97_v53 = vpack.c.bf16 %v65_v50, %v65_v50  ;;  %v3855_v50 = vld [vmem:[#allocation5 + $0x418] sm:$0xff]  }
  0x49   :  { %3355 = vmatpush3.bf16.msra.mxu0 %v3755_v54  ;;  %v94_v54 = vpack.c.bf16 %v62_v51, %v62_v51  ;;  %v3856_v51 = vld [vmem:[#allocation5 + $0x498] sm:$0xff]  }
  0x4a   :  { %3377 = vmatpush3.bf16.msra.mxu1 %v3756_v55  ;;  %3356 = vmatprep.subr.bf16.mxu0 %v3757_v56  ;;  %v96_v55 = vpack.c.bf16 %v64_v52, %v64_v52  ;;  %v3805_v56 = vld [vmem:[#allocation5 + $0x378] sm:$0xff]   ;;  %v3857_v52 = vld [vmem:[#allocation5 + $0x450] sm:$0xff]  }
  0x4b   :  { %3378 = vmatprep.subr.bf16.mxu1 %v3758_v57  ;;  %v3806_v57 = vld [vmem:[#allocation5 + $0x3f8] sm:$0xff]  }
  0x4d   :  { %3357 = vmatpush3.bf16.msra.mxu0 %v3759_v58  ;;  %v3807_v58 = vld [vmem:[#allocation5 + $0x338] sm:$0xff]  }
  0x4e   :  { %3379 = vmatpush3.bf16.msra.mxu1 %v3760_v59  ;;  %3358 = vmatprep.subr.bf16.mxu0 %v3761_v60  ;;  %v3808_v59 = vld [vmem:[#allocation5 + $0x3b8] sm:$0xff]   ;;  %v3809_v60 = vld [vmem:[#allocation5 + $0x370] sm:$0xff]  }
  0x4f   :  { %3380 = vmatprep.subr.bf16.mxu1 %v3762_v61  ;;  %v3810_v61 = vld [vmem:[#allocation5 + $0x3f0] sm:$0xff]  }
  0x51   :  { %3359 = vmatpush3.bf16.msra.mxu0 %v3763_v62  ;;  %v3811_v62 = vld [vmem:[#allocation5 + $0x330] sm:$0xff]  }
  0x52   :  { %3381 = vmatpush3.bf16.msra.mxu1 %v3764_v63  ;;  %3360 = vmatprep.subr.bf16.mxu0 %v3765_v0  ;;  %v3812_v63 = vld [vmem:[#allocation5 + $0x3b0] sm:$0xff]   ;;  %v3813_v0 = vld [vmem:[#allocation5 + $0x368] sm:$0xff]  }
  0x53   :  { %3382 = vmatprep.subr.bf16.mxu1 %v3766_v1  ;;  %v3814_v1 = vld [vmem:[#allocation5 + $0x3e8] sm:$0xff]  }
  0x55   :  { %3361 = vmatpush3.bf16.msra.mxu0 %v3767_v2  ;;  %v3815_v2 = vld [vmem:[#allocation5 + $0x328] sm:$0xff]  }
  0x56   :  { %3383 = vmatpush3.bf16.msra.mxu1 %v3768_v3  ;;  %3362 = vmatprep.subr.bf16.mxu0 %v3769_v4  ;;  %v3816_v3 = vld [vmem:[#allocation5 + $0x3a8] sm:$0xff]   ;;  %v3817_v4 = vld [vmem:[#allocation5 + $0x360] sm:$0xff]  }
  0x57   :  { %3384 = vmatprep.subr.bf16.mxu1 %v3770_v5  ;;  %v3818_v5 = vld [vmem:[#allocation5 + $0x3e0] sm:$0xff]  }
  0x59   :  { %3363 = vmatpush3.bf16.msra.mxu0 %v3771_v6  ;;  %v3819_v6 = vld [vmem:[#allocation5 + $0x320] sm:$0xff]  }
  0x5a   :  { %3385 = vmatpush3.bf16.msra.mxu1 %v3772_v7  ;;  %3392 = vmatprep.subr.bf16.mxu0 %v3773_v16  ;;  %v3820_v7 = vld [vmem:[#allocation5 + $0x3a0] sm:$0xff]   ;;  %v3829_v16 = vld [vmem:[#allocation5 + $0x348] sm:$0xff]  }
  0x5b   :  { %3414 = vmatprep.subr.bf16.mxu1 %v3774_v17  ;;  %v3830_v17 = vld [vmem:[#allocation5 + $0x3c8] sm:$0xff]  }
  0x5c   :  { %2286 = vmatmul.mubr.bf16.vlgmr.msra.gmra.mxu0 %v90_v14  ;;  %v3827_v14 = vld [vmem:[#allocation5 + $0x310] sm:$0xff]  }
  0x5d   :  { %2326 = vmatmul.mubr.bf16.vlgmr.msra.gmra.mxu1 %v92_v15  ;;  %3393 = vmatpush3.bf16.msra.mxu0 %v3775_v18  ;;  %v3828_v15 = vld [vmem:[#allocation5 + $0x390] sm:$0xff]   ;;  %v3831_v18 = vld [vmem:[#allocation5 + $0x308] sm:$0xff]  }
  0x5e   :  { %3415 = vmatpush3.bf16.msra.mxu1 %v3776_v19  ;;  %3394 = vmatprep.subr.bf16.mxu0 %v3777_v20  ;;  %v3832_v19 = vld [vmem:[#allocation5 + $0x388] sm:$0xff]   ;;  %v3833_v20 = vld [vmem:[#allocation5 + $0x340] sm:$0xff]  }
  0x5f   :  { %3416 = vmatprep.subr.bf16.mxu1 %v3778_v21  ;;  %2365 = vmatprep.mubr.bf16.mxu0 %v95_v49  ;;  %v3834_v21 = vld [vmem:[#allocation5 + $0x3c0] sm:$0xff]   ;;  %v3854_v49 = vld [vmem:[#allocation5 + $0x4d8] sm:$0xff]  }
  0x60   :  { %2405 = vmatprep.mubr.bf16.mxu1 %v97_v53  ;;  %v3858_v53 = vld [vmem:[#allocation5 + $0x4d0] sm:$0xff]  }
  0x61   :  { %3395 = vmatpush3.bf16.msra.mxu0 %v3779_v22  ;;  %v3835_v22 = vld [vmem:[#allocation5 + $0x300] sm:$0xff]  }
  0x62   :  { %3417 = vmatpush3.bf16.msra.mxu1 %v3780_v23  ;;  %3396 = vmatprep.subr.bf16.mxu0 %v3781_v24  ;;  %v3836_v23 = vld [vmem:[#allocation5 + $0x380] sm:$0xff]   ;;  %v67_v24 = vld [vmem:[#allocation2 + $0x68] sm:$0xff] }
  0x63   :  { %3418 = vmatprep.subr.bf16.mxu1 %v3782_v25  ;;  %v69_v25 = vld [vmem:[#allocation2 + $0x78] sm:$0xff] }
  0x65   :  { %3397 = vmatpush3.bf16.msra.mxu0 %v3783_v26  ;;  %v66_v26 = vld [vmem:[#allocation2 + $0x60] sm:$0xff] }
  0x66   :  { %3419 = vmatpush3.bf16.msra.mxu1 %v3784_v27  ;;  %3398 = vmatprep.subr.bf16.mxu0 %v3785_v28  ;;  %v99_v27 = vpack.c.bf16 %v67_v24, %v67_v24  ;;  %v101_v28 = vpack.c.bf16 %v69_v25, %v69_v25  ;;  %v3885_v24 = vld [vmem:[#allocation5 + $0x558] sm:$0xff]  }
  0x67   :  { %3420 = vmatprep.subr.bf16.mxu1 %v3786_v29  ;;  %v98_v29 = vpack.c.bf16 %v66_v26, %v66_v26  ;;  %v3886_v25 = vld [vmem:[#allocation5 + $0x5d8] sm:$0xff]  }
  0x68   :  { %v3887_v26 = vld [vmem:[#allocation5 + $0x518] sm:$0xff]  }
  0x69   :  { %3399 = vmatpush3.bf16.msra.mxu0 %v3787_v30  ;;  %v68_v30 = vld [vmem:[#allocation2 + $0x70] sm:$0xff] }
  0x6a   :  { %3421 = vmatpush3.bf16.msra.mxu1 %v3788_v31  ;;  %3400 = vmatprep.subr.bf16.mxu0 %v3789_v32  ;;  %v100_v31 = vpack.c.bf16 %v68_v30, %v68_v30  ;;  %v3837_v32 = vld [vmem:[#allocation5 + $0x478] sm:$0xff]   ;;  %v3891_v30 = vld [vmem:[#allocation5 + $0x510] sm:$0xff]  }
  0x6b   :  { %3422 = vmatprep.subr.bf16.mxu1 %v3790_v33  ;;  %v3838_v33 = vld [vmem:[#allocation5 + $0x4f8] sm:$0xff]  }
  0x6d   :  { %3401 = vmatpush3.bf16.msra.mxu0 %v3791_v34  ;;  %v3839_v34 = vld [vmem:[#allocation5 + $0x438] sm:$0xff]  }
  0x6e   :  { %3423 = vmatpush3.bf16.msra.mxu1 %v3792_v35  ;;  %3402 = vmatprep.subr.bf16.mxu0 %v3793_v36  ;;  %v3840_v35 = vld [vmem:[#allocation5 + $0x4b8] sm:$0xff]   ;;  %v3841_v36 = vld [vmem:[#allocation5 + $0x470] sm:$0xff]  }
  0x6f   :  { %3424 = vmatprep.subr.bf16.mxu1 %v3794_v37  ;;  %v3842_v37 = vld [vmem:[#allocation5 + $0x4f0] sm:$0xff]  }
  0x71   :  { %3403 = vmatpush3.bf16.msra.mxu0 %v3795_v38  ;;  %v3843_v38 = vld [vmem:[#allocation5 + $0x430] sm:$0xff]  }
  0x72   :  { %3425 = vmatpush3.bf16.msra.mxu1 %v3796_v39  ;;  %3404 = vmatprep.subr.bf16.mxu0 %v3797_v40  ;;  %v3844_v39 = vld [vmem:[#allocation5 + $0x4b0] sm:$0xff]   ;;  %v3845_v40 = vld [vmem:[#allocation5 + $0x468] sm:$0xff]  }
  0x73   :  { %3426 = vmatprep.subr.bf16.mxu1 %v3798_v41  ;;  %v3846_v41 = vld [vmem:[#allocation5 + $0x4e8] sm:$0xff]  }
  0x75   :  { %3405 = vmatpush3.bf16.msra.mxu0 %v3799_v42  ;;  %v3847_v42 = vld [vmem:[#allocation5 + $0x428] sm:$0xff]  }
  0x76   :  { %3427 = vmatpush3.bf16.msra.mxu1 %v3800_v43  ;;  %3406 = vmatprep.subr.bf16.mxu0 %v3801_v44  ;;  %v3848_v43 = vld [vmem:[#allocation5 + $0x4a8] sm:$0xff]   ;;  %v3849_v44 = vld [vmem:[#allocation5 + $0x460] sm:$0xff]  }
  0x77   :  { %3428 = vmatprep.subr.bf16.mxu1 %v3802_v45  ;;  %v3850_v45 = vld [vmem:[#allocation5 + $0x4e0] sm:$0xff]  }
  0x79   :  { %3407 = vmatpush3.bf16.msra.mxu0 %v3803_v46  ;;  %v3851_v46 = vld [vmem:[#allocation5 + $0x420] sm:$0xff]  }
  0x7a   :  { %3429 = vmatpush3.bf16.msra.mxu1 %v3804_v47  ;;  %3436 = vmatprep.subr.bf16.mxu0 %v3805_v56  ;;  %v3852_v47 = vld [vmem:[#allocation5 + $0x4a0] sm:$0xff]   ;;  %v3861_v56 = vld [vmem:[#allocation5 + $0x448] sm:$0xff]  }
  0x7b   :  { %3458 = vmatprep.subr.bf16.mxu1 %v3806_v57  ;;  %v3862_v57 = vld [vmem:[#allocation5 + $0x4c8] sm:$0xff]  }
  0x7c   :  { %2366 = vmatmul.mubr.bf16.vlgmr.msra.gmra.mxu0 %v94_v54  ;;  %v3859_v54 = vld [vmem:[#allocation5 + $0x410] sm:$0xff]  }
  0x7d   :  { %2406 = vmatmul.mubr.bf16.vlgmr.msra.gmra.mxu1 %v96_v55  ;;  %3437 = vmatpush3.bf16.msra.mxu0 %v3807_v58  ;;  %v3860_v55 = vld [vmem:[#allocation5 + $0x490] sm:$0xff]   ;;  %v3863_v58 = vld [vmem:[#allocation5 + $0x408] sm:$0xff]  }
  0x7e   :  { %3459 = vmatpush3.bf16.msra.mxu1 %v3808_v59  ;;  %3438 = vmatprep.subr.bf16.mxu0 %v3809_v60  ;;  %v3864_v59 = vld [vmem:[#allocation5 + $0x488] sm:$0xff]   ;;  %v3865_v60 = vld [vmem:[#allocation5 + $0x440] sm:$0xff]  }
  0x7f   :  { %3460 = vmatprep.subr.bf16.mxu1 %v3810_v61  ;;  %2445 = vmatprep.mubr.bf16.mxu0 %v99_v27  ;;  %v3866_v61 = vld [vmem:[#allocation5 + $0x4c0] sm:$0xff]   ;;  %v3888_v27 = vld [vmem:[#allocation5 + $0x598] sm:$0xff]  }
  0x80   :  { %2485 = vmatprep.mubr.bf16.mxu1 %v101_v28  ;;  %v3889_v28 = vld [vmem:[#allocation5 + $0x550] sm:$0xff]  }
  0x81   :  { %3439 = vmatpush3.bf16.msra.mxu0 %v3811_v62  ;;  %v3867_v62 = vld [vmem:[#allocation5 + $0x400] sm:$0xff]  }
  0x82   :  { %3461 = vmatpush3.bf16.msra.mxu1 %v3812_v63  ;;  %3440 = vmatprep.subr.bf16.mxu0 %v3813_v0  ;;  %v3868_v63 = vld [vmem:[#allocation5 + $0x480] sm:$0xff]   ;;  %v71_v0 = vld [vmem:[#allocation2 + $0x88] sm:$0xff] }
  0x83   :  { %3462 = vmatprep.subr.bf16.mxu1 %v3814_v1  ;;  %v73_v1 = vld [vmem:[#allocation2 + $0x98] sm:$0xff] }
  0x85   :  { %3441 = vmatpush3.bf16.msra.mxu0 %v3815_v2  ;;  %v103_v2 = vpack.c.bf16 %v71_v0, %v71_v0  ;;  %v3917_v0 = vld [vmem:[#allocation5 + $0x658] sm:$0xff]  }
  0x86   :  { %3463 = vmatpush3.bf16.msra.mxu1 %v3816_v3  ;;  %3442 = vmatprep.subr.bf16.mxu0 %v3817_v4  ;;  %v105_v3 = vpack.c.bf16 %v73_v1, %v73_v1  ;;  %v70_v4 = vld [vmem:[#allocation2 + $0x80] sm:$0xff]  ;;  %v3918_v1 = vld [vmem:[#allocation5 + $0x6d8] sm:$0xff]  }
  0x87   :  { %3464 = vmatprep.subr.bf16.mxu1 %v3818_v5  ;;  %v72_v5 = vld [vmem:[#allocation2 + $0x90] sm:$0xff] }
  0x89   :  { %3443 = vmatpush3.bf16.msra.mxu0 %v3819_v6  ;;  %v102_v6 = vpack.c.bf16 %v70_v4, %v70_v4  ;;  %v3921_v4 = vld [vmem:[#allocation5 + $0x650] sm:$0xff]  }
  0x8a   :  { %3465 = vmatpush3.bf16.msra.mxu1 %v3820_v7  ;;  %3444 = vmatprep.subr.bf16.mxu0 %v3821_v8  ;;  %v104_v7 = vpack.c.bf16 %v72_v5, %v72_v5  ;;  %v3869_v8 = vld [vmem:[#allocation5 + $0x578] sm:$0xff]   ;;  %v3922_v5 = vld [vmem:[#allocation5 + $0x6d0] sm:$0xff]  }
  0x8b   :  { %3466 = vmatprep.subr.bf16.mxu1 %v3822_v9  ;;  %v3870_v9 = vld [vmem:[#allocation5 + $0x5f8] sm:$0xff]  }
  0x8d   :  { %3445 = vmatpush3.bf16.msra.mxu0 %v3823_v10  ;;  %v3871_v10 = vld [vmem:[#allocation5 + $0x538] sm:$0xff]  }
  0x8e   :  { %3467 = vmatpush3.bf16.msra.mxu1 %v3824_v11  ;;  %3446 = vmatprep.subr.bf16.mxu0 %v3825_v12  ;;  %v3872_v11 = vld [vmem:[#allocation5 + $0x5b8] sm:$0xff]   ;;  %v3873_v12 = vld [vmem:[#allocation5 + $0x570] sm:$0xff]  }
  0x8f   :  { %3468 = vmatprep.subr.bf16.mxu1 %v3826_v13  ;;  %v3874_v13 = vld [vmem:[#allocation5 + $0x5f0] sm:$0xff]  }
  0x91   :  { %3447 = vmatpush3.bf16.msra.mxu0 %v3827_v14  ;;  %v3875_v14 = vld [vmem:[#allocation5 + $0x530] sm:$0xff]  }
  0x92   :  { %3469 = vmatpush3.bf16.msra.mxu1 %v3828_v15  ;;  %3448 = vmatprep.subr.bf16.mxu0 %v3829_v16  ;;  %v3876_v15 = vld [vmem:[#allocation5 + $0x5b0] sm:$0xff]   ;;  %v3877_v16 = vld [vmem:[#allocation5 + $0x568] sm:$0xff]  }
  0x93   :  { %3470 = vmatprep.subr.bf16.mxu1 %v3830_v17  ;;  %v3878_v17 = vld [vmem:[#allocation5 + $0x5e8] sm:$0xff]  }
  0x95   :  { %3449 = vmatpush3.bf16.msra.mxu0 %v3831_v18  ;;  %v3879_v18 = vld [vmem:[#allocation5 + $0x528] sm:$0xff]  }
  0x96   :  { %3471 = vmatpush3.bf16.msra.mxu1 %v3832_v19  ;;  %3450 = vmatprep.subr.bf16.mxu0 %v3833_v20  ;;  %v3880_v19 = vld [vmem:[#allocation5 + $0x5a8] sm:$0xff]   ;;  %v3881_v20 = vld [vmem:[#allocation5 + $0x560] sm:$0xff]  }
  0x97   :  { %3472 = vmatprep.subr.bf16.mxu1 %v3834_v21  ;;  %v3882_v21 = vld [vmem:[#allocation5 + $0x5e0] sm:$0xff]  }
  0x99   :  { %3451 = vmatpush3.bf16.msra.mxu0 %v3835_v22  ;;  %v3883_v22 = vld [vmem:[#allocation5 + $0x520] sm:$0xff]  }
  0x9a   :  { %3473 = vmatpush3.bf16.msra.mxu1 %v3836_v23  ;;  %3480 = vmatprep.subr.bf16.mxu0 %v3837_v32  ;;  %v3884_v23 = vld [vmem:[#allocation5 + $0x5a0] sm:$0xff]   ;;  %v3893_v32 = vld [vmem:[#allocation5 + $0x548] sm:$0xff]  }
  0x9b   :  { %3502 = vmatprep.subr.bf16.mxu1 %v3838_v33  ;;  %v3894_v33 = vld [vmem:[#allocation5 + $0x5c8] sm:$0xff]  }
  0x9c   :  { %2446 = vmatmul.mubr.bf16.vlgmr.msra.gmra.mxu0 %v98_v29  ;;  %v3890_v29 = vld [vmem:[#allocation5 + $0x5d0] sm:$0xff]  }
  0x9d   :  { %2486 = vmatmul.mubr.bf16.vlgmr.msra.gmra.mxu1 %v100_v31  ;;  %3481 = vmatpush3.bf16.msra.mxu0 %v3839_v34  ;;  %v3892_v31 = vld [vmem:[#allocation5 + $0x590] sm:$0xff]   ;;  %v3895_v34 = vld [vmem:[#allocation5 + $0x508] sm:$0xff]  }
  0x9e   :  { %3503 = vmatpush3.bf16.msra.mxu1 %v3840_v35  ;;  %3482 = vmatprep.subr.bf16.mxu0 %v3841_v36  ;;  %v3896_v35 = vld [vmem:[#allocation5 + $0x588] sm:$0xff]   ;;  %v3897_v36 = vld [vmem:[#allocation5 + $0x540] sm:$0xff]  }
  0x9f   :  { %3504 = vmatprep.subr.bf16.mxu1 %v3842_v37  ;;  %2525 = vmatprep.mubr.bf16.mxu0 %v103_v2  ;;  %v3898_v37 = vld [vmem:[#allocation5 + $0x5c0] sm:$0xff]   ;;  %v3919_v2 = vld [vmem:[#allocation5 + $0x618] sm:$0xff]  }
  0xa0   :  { %2565 = vmatprep.mubr.bf16.mxu1 %v105_v3  ;;  %v3920_v3 = vld [vmem:[#allocation5 + $0x698] sm:$0xff]  }
  0xa1   :  { %3483 = vmatpush3.bf16.msra.mxu0 %v3843_v38  ;;  %v3899_v38 = vld [vmem:[#allocation5 + $0x500] sm:$0xff]  }
  0xa2   :  { %3505 = vmatpush3.bf16.msra.mxu1 %v3844_v39  ;;  %3484 = vmatprep.subr.bf16.mxu0 %v3845_v40  ;;  %v3900_v39 = vld [vmem:[#allocation5 + $0x580] sm:$0xff]   ;;  %v75_v40 = vld [vmem:[#allocation2 + $0xa8] sm:$0xff] }
  0xa3   :  { %3506 = vmatprep.subr.bf16.mxu1 %v3846_v41  ;;  %v107_v41 = vpack.c.bf16 %v75_v40, %v75_v40  ;;  %v3937_v40 = vld [vmem:[#allocation5 + $0x770] sm:$0xff]  }
  0xa5   :  { %3485 = vmatpush3.bf16.msra.mxu0 %v3847_v42  ;;  %v77_v42 = vld [vmem:[#allocation2 + $0xb8] sm:$0xff] }
  0xa6   :  { %3507 = vmatpush3.bf16.msra.mxu1 %v3848_v43  ;;  %3486 = vmatprep.subr.bf16.mxu0 %v3849_v44  ;;  %v74_v43 = vld [vmem:[#allocation2 + $0xa0] sm:$0xff]  ;;  %v76_v44 = vld [vmem:[#allocation2 + $0xb0] sm:$0xff] }
  0xa7   :  { %3508 = vmatprep.subr.bf16.mxu1 %v3850_v45  ;;  %v109_v45 = vpack.c.bf16 %v77_v42, %v77_v42 }
  0xa9   :  { %3487 = vmatpush3.bf16.msra.mxu0 %v3851_v46  ;;  %v106_v46 = vpack.c.bf16 %v74_v43, %v74_v43  ;;  %v3939_v43 = vld [vmem:[#allocation5 + $0x730] sm:$0xff]  }
  0xaa   :  { %3509 = vmatpush3.bf16.msra.mxu1 %v3852_v47  ;;  %3488 = vmatprep.subr.bf16.mxu0 %v3853_v48  ;;  %v108_v47 = vpack.c.bf16 %v76_v44, %v76_v44  ;;  %v3901_v48 = vld [vmem:[#allocation5 + $0x678] sm:$0xff]   ;;  %v3940_v44 = vld [vmem:[#allocation5 + $0x7b0] sm:$0xff]  }
  0xab   :  { %3510 = vmatprep.subr.bf16.mxu1 %v3854_v49  ;;  %v3902_v49 = vld [vmem:[#allocation5 + $0x6f8] sm:$0xff]  }
  0xad   :  { %3489 = vmatpush3.bf16.msra.mxu0 %v3855_v50  ;;  %v3903_v50 = vld [vmem:[#allocation5 + $0x638] sm:$0xff]  }
  0xae   :  { %3511 = vmatpush3.bf16.msra.mxu1 %v3856_v51  ;;  %3490 = vmatprep.subr.bf16.mxu0 %v3857_v52  ;;  %v3904_v51 = vld [vmem:[#allocation5 + $0x6b8] sm:$0xff]   ;;  %v3905_v52 = vld [vmem:[#allocation5 + $0x670] sm:$0xff]  }
  0xaf   :  { %3512 = vmatprep.subr.bf16.mxu1 %v3858_v53  ;;  %v3906_v53 = vld [vmem:[#allocation5 + $0x6f0] sm:$0xff]  }
  0xb1   :  { %3491 = vmatpush3.bf16.msra.mxu0 %v3859_v54  ;;  %v3907_v54 = vld [vmem:[#allocation5 + $0x630] sm:$0xff]  }
  0xb2   :  { %3513 = vmatpush3.bf16.msra.mxu1 %v3860_v55  ;;  %3492 = vmatprep.subr.bf16.mxu0 %v3861_v56  ;;  %v3908_v55 = vld [vmem:[#allocation5 + $0x6b0] sm:$0xff]   ;;  %v3909_v56 = vld [vmem:[#allocation5 + $0x668] sm:$0xff]  }
  0xb3   :  { %3514 = vmatprep.subr.bf16.mxu1 %v3862_v57  ;;  %v3910_v57 = vld [vmem:[#allocation5 + $0x6e8] sm:$0xff]  }
  0xb5   :  { %3493 = vmatpush3.bf16.msra.mxu0 %v3863_v58  ;;  %v3911_v58 = vld [vmem:[#allocation5 + $0x628] sm:$0xff]  }
  0xb6   :  { %3515 = vmatpush3.bf16.msra.mxu1 %v3864_v59  ;;  %3494 = vmatprep.subr.bf16.mxu0 %v3865_v60  ;;  %v3912_v59 = vld [vmem:[#allocation5 + $0x6a8] sm:$0xff]   ;;  %v3913_v60 = vld [vmem:[#allocation5 + $0x660] sm:$0xff]  }
  0xb7   :  { %3516 = vmatprep.subr.bf16.mxu1 %v3866_v61  ;;  %v3914_v61 = vld [vmem:[#allocation5 + $0x6e0] sm:$0xff]  }
  0xb9   :  { %3495 = vmatpush3.bf16.msra.mxu0 %v3867_v62  ;;  %v3915_v62 = vld [vmem:[#allocation5 + $0x620] sm:$0xff]  }
  0xba   :  { %3517 = vmatpush3.bf16.msra.mxu1 %v3868_v63  ;;  %3524 = vmatprep.subr.bf16.mxu0 %v3869_v8  ;;  %v3916_v63 = vld [vmem:[#allocation5 + $0x6a0] sm:$0xff]   ;;  %v3925_v8 = vld [vmem:[#allocation5 + $0x648] sm:$0xff]  }
  0xbb   :  { %3546 = vmatprep.subr.bf16.mxu1 %v3870_v9  ;;  %v3926_v9 = vld [vmem:[#allocation5 + $0x6c8] sm:$0xff]  }
  0xbc   :  { %2526 = vmatmul.mubr.bf16.vlgmr.msra.gmra.mxu0 %v102_v6  ;;  %v3923_v6 = vld [vmem:[#allocation5 + $0x610] sm:$0xff]  }
  0xbd   :  { %2566 = vmatmul.mubr.bf16.vlgmr.msra.gmra.mxu1 %v104_v7  ;;  %3525 = vmatpush3.bf16.msra.mxu0 %v3871_v10  ;;  %v3924_v7 = vld [vmem:[#allocation5 + $0x690] sm:$0xff]   ;;  %v3927_v10 = vld [vmem:[#allocation5 + $0x608] sm:$0xff]  }
  0xbe   :  { %3547 = vmatpush3.bf16.msra.mxu1 %v3872_v11  ;;  %3526 = vmatprep.subr.bf16.mxu0 %v3873_v12  ;;  %v3928_v11 = vld [vmem:[#allocation5 + $0x688] sm:$0xff]   ;;  %v3929_v12 = vld [vmem:[#allocation5 + $0x640] sm:$0xff]  }
  0xbf   :  { %3548 = vmatprep.subr.bf16.mxu1 %v3874_v13  ;;  %2605 = vmatprep.mubr.bf16.mxu0 %v107_v41  ;;  %v3938_v41 = vld [vmem:[#allocation5 + $0x7f0] sm:$0xff]  }
  0xc0   :  { %2645 = vmatprep.mubr.bf16.mxu1 %v109_v45  ;;  %v3941_v45 = vld [vmem:[#allocation5 + $0x768] sm:$0xff]  }
  0xc1   :  { %3527 = vmatpush3.bf16.msra.mxu0 %v3875_v14 }
  0xc2   :  { %3549 = vmatpush3.bf16.msra.mxu1 %v3876_v15  ;;  %3528 = vmatprep.subr.bf16.mxu0 %v3877_v16  ;;  %v3930_v15 = vld [vmem:[#allocation5 + $0x6c0] sm:$0xff]  }
  0xc3   :  { %3550 = vmatprep.subr.bf16.mxu1 %v3878_v17  ;;  %v3931_v16 = vld [vmem:[#allocation5 + $0x600] sm:$0xff]  }
  0xc5   :  { %3529 = vmatpush3.bf16.msra.mxu0 %v3879_v18 }
  0xc6   :  { %3551 = vmatpush3.bf16.msra.mxu1 %v3880_v19  ;;  %3530 = vmatprep.subr.bf16.mxu0 %v3881_v20  ;;  %v3932_v19 = vld [vmem:[#allocation5 + $0x680] sm:$0xff]  }
  0xc7   :  { %3552 = vmatprep.subr.bf16.mxu1 %v3882_v21 }
  0xc9   :  { %3531 = vmatpush3.bf16.msra.mxu0 %v3883_v22  ;;  %v79_v22 = vld [vmem:[#allocation2 + $0xc8] sm:$0xff] }
  0xca   :  { %3553 = vmatpush3.bf16.msra.mxu1 %v3884_v23  ;;  %3532 = vmatprep.subr.bf16.mxu0 %v3885_v24  ;;  %v81_v23 = vld [vmem:[#allocation2 + $0xd8] sm:$0xff]  ;;  %v78_v24 = vld [vmem:[#allocation2 + $0xc0] sm:$0xff] }
  0xcb   :  { %3554 = vmatprep.subr.bf16.mxu1 %v3886_v25 }
  0xcd   :  { %3533 = vmatpush3.bf16.msra.mxu0 %v3887_v26 }
  0xce   :  { %3555 = vmatpush3.bf16.msra.mxu1 %v3888_v27  ;;  %3534 = vmatprep.subr.bf16.mxu0 %v3889_v28  ;;  %v111_v27 = vpack.c.bf16 %v79_v22, %v79_v22  ;;  %v113_v28 = vpack.c.bf16 %v81_v23, %v81_v23 }
  0xcf   :  { %3556 = vmatprep.subr.bf16.mxu1 %v3890_v29  ;;  %v110_v29 = vpack.c.bf16 %v78_v24, %v78_v24 }
  0xd1   :  { %3535 = vmatpush3.bf16.msra.mxu0 %v3891_v30  ;;  %v80_v30 = vld [vmem:[#allocation2 + $0xd0] sm:$0xff] }
  0xd2   :  { %3557 = vmatpush3.bf16.msra.mxu1 %v3892_v31  ;;  %3536 = vmatprep.subr.bf16.mxu0 %v3893_v32  ;;  %v112_v31 = vpack.c.bf16 %v80_v30, %v80_v30  ;;  %v3933_v32 = vld [vmem:[#allocation5 + $0x778] sm:$0xff]  }
  0xd3   :  { %3558 = vmatprep.subr.bf16.mxu1 %v3894_v33 }
  0xd5   :  { %3537 = vmatpush3.bf16.msra.mxu0 %v3895_v34 }
  0xd6   :  { %3559 = vmatpush3.bf16.msra.mxu1 %v3896_v35  ;;  %3538 = vmatprep.subr.bf16.mxu0 %v3897_v36  ;;  %v3934_v35 = vld [vmem:[#allocation5 + $0x7f8] sm:$0xff]  }
  0xd7   :  { %3560 = vmatprep.subr.bf16.mxu1 %v3898_v37  ;;  %v3935_v36 = vld [vmem:[#allocation5 + $0x738] sm:$0xff]  }
  0xd8   :  { %v3936_v37 = vld [vmem:[#allocation5 + $0x7b8] sm:$0xff]  }
  0xd9   :  { %3539 = vmatpush3.bf16.msra.mxu0 %v3899_v38  ;;  %v3032_v38 = vld [vmem:[%s4167_s2] ss:$0 sm:$0xff] }
  0xda   :  { %3561 = vmatpush3.bf16.msra.mxu1 %v3900_v39  ;;  %3568 = vmatprep.subr.bf16.mxu0 %v3901_v48  ;;  %v3944_v48 = vld [vmem:[#allocation5 + $0x7a8] sm:$0xff]  }
  0xdb   :  { %3590 = vmatprep.subr.bf16.mxu1 %v3902_v49  ;;  %v3945_v49 = vld [vmem:[#allocation5 + $0x760] sm:$0xff]  }
  0xdc   :  { %2606 = vmatmul.mubr.bf16.vlgmr.msra.gmra.mxu0 %v106_v46  ;;  %v3942_v46 = vld [vmem:[#allocation5 + $0x7e8] sm:$0xff]  }
  0xdd   :  { %2646 = vmatmul.mubr.bf16.vlgmr.msra.gmra.mxu1 %v108_v47  ;;  %3569 = vmatpush3.bf16.msra.mxu0 %v3903_v50  ;;  %v3943_v47 = vld [vmem:[#allocation5 + $0x728] sm:$0xff]   ;;  %v3946_v50 = vld [vmem:[#allocation5 + $0x7e0] sm:$0xff]  }
  0xde   :  { %3591 = vmatpush3.bf16.msra.mxu1 %v3904_v51  ;;  %3570 = vmatprep.subr.bf16.mxu0 %v3905_v52  ;;  %v3947_v51 = vld [vmem:[#allocation5 + $0x720] sm:$0xff]  }
  0xdf   :  { %3592 = vmatprep.subr.bf16.mxu1 %v3906_v53  ;;  %2685 = vmatprep.mubr.bf16.mxu0 %v111_v27  ;;  %v3948_v52 = vld [vmem:[#allocation5 + $0x7a0] sm:$0xff]   ;;  %v3949_v53 = vld [vmem:[#allocation5 + $0x758] sm:$0xff]  }
  0xe0   :  { %2725 = vmatprep.mubr.bf16.mxu1 %v113_v28 }
  0xe1   :  { %3571 = vmatpush3.bf16.msra.mxu0 %v3907_v54  ;;  %v3950_v54 = vld [vmem:[#allocation5 + $0x7d8] sm:$0xff]  }
  0xe2   :  { %3593 = vmatpush3.bf16.msra.mxu1 %v3908_v55  ;;  %3572 = vmatprep.subr.bf16.mxu0 %v3909_v56  ;;  %v3951_v55 = vld [vmem:[#allocation5 + $0x718] sm:$0xff]  }
  0xe3   :  { %3594 = vmatprep.subr.bf16.mxu1 %v3910_v57  ;;  %v3952_v56 = vld [vmem:[#allocation5 + $0x798] sm:$0xff]   ;;  %v3953_v57 = vld [vmem:[#allocation5 + $0x750] sm:$0xff]  }
  0xe5   :  { %3573 = vmatpush3.bf16.msra.mxu0 %v3911_v58  ;;  %v3954_v58 = vld [vmem:[#allocation5 + $0x7d0] sm:$0xff]  }
  0xe6   :  { %3595 = vmatpush3.bf16.msra.mxu1 %v3912_v59  ;;  %3574 = vmatprep.subr.bf16.mxu0 %v3913_v60  ;;  %v3955_v59 = vld [vmem:[#allocation5 + $0x710] sm:$0xff]  }
  0xe7   :  { %3596 = vmatprep.subr.bf16.mxu1 %v3914_v61  ;;  %v3956_v60 = vld [vmem:[#allocation5 + $0x790] sm:$0xff]   ;;  %v3957_v61 = vld [vmem:[#allocation5 + $0x748] sm:$0xff]  }
  0xe9   :  { %3575 = vmatpush3.bf16.msra.mxu0 %v3915_v62  ;;  %v3958_v62 = vld [vmem:[#allocation5 + $0x7c8] sm:$0xff]  }
  0xea   :  { %3597 = vmatpush3.bf16.msra.mxu1 %v3916_v63  ;;  %3576 = vmatprep.subr.bf16.mxu0 %v3917_v0  ;;  %v3959_v63 = vld [vmem:[#allocation5 + $0x708] sm:$0xff]  }
  0xeb   :  { %3598 = vmatprep.subr.bf16.mxu1 %v3918_v1  ;;  %v3960_v0 = vld [vmem:[#allocation5 + $0x788] sm:$0xff]  }
  0xed   :  { %3577 = vmatpush3.bf16.msra.mxu0 %v3919_v2  ;;  %v3961_v2 = vld [vmem:[#allocation5 + $0x740] sm:$0xff]  }
  0xee   :  { %3599 = vmatpush3.bf16.msra.mxu1 %v3920_v3  ;;  %3578 = vmatprep.subr.bf16.mxu0 %v3921_v4  ;;  %v3962_v4 = vld [vmem:[#allocation5 + $0x7c0] sm:$0xff]  }
  0xef   :  { %3600 = vmatprep.subr.bf16.mxu1 %v3922_v5 }
  0xf1   :  { %3579 = vmatpush3.bf16.msra.mxu0 %v3923_v6  ;;  %v3963_v6 = vld [vmem:[#allocation5 + $0x700] sm:$0xff]  }
  0xf2   :  { %3601 = vmatpush3.bf16.msra.mxu1 %v3924_v7  ;;  %3580 = vmatprep.subr.bf16.mxu0 %v3925_v8 }
  0xf3   :  { %3602 = vmatprep.subr.bf16.mxu1 %v3926_v9  ;;  %v3964_v9 = vld [vmem:[#allocation5 + $0x780] sm:$0xff]  }
  0xf5   :  { %3581 = vmatpush3.bf16.msra.mxu0 %v3927_v10  ;;  %v83_v10 = vld [vmem:[#allocation2 + $0xe8] sm:$0xff] }
  0xf6   :  { %3603 = vmatpush3.bf16.msra.mxu1 %v3928_v11  ;;  %3582 = vmatprep.subr.bf16.mxu0 %v3929_v12 }
  0xf7   :  { %3604 = vmatprep.subr.bf16.mxu1 %v3930_v15  ;;  %v82_v15 = vld [vmem:[#allocation2 + $0xe0] sm:$0xff] }
  0xf9   :  { %3583 = vmatpush3.bf16.msra.mxu0 %v3931_v16  ;;  %v84_v16 = vld [vmem:[#allocation2 + $0xf0] sm:$0xff] }
  0xfa   :  { %3605 = vmatpush3.bf16.msra.mxu1 %v3932_v19  ;;  %3612 = vmatprep.subr.bf16.mxu0 %v3933_v32 }
  0xfb   :  { %3634 = vmatprep.subr.bf16.mxu1 %v3934_v35 }
  0xfc   :  { %v3320_v13 = vpop.f32.mrf.mxu0  ;;  %2686 = vmatmul.mubr.bf16.vlgmr.msra.gmra.mxu0 %v110_v29 }
  0xfd   :  { %v3342_v14 = vpop.f32.mrf.mxu1  ;;  %2726 = vmatmul.mubr.bf16.vlgmr.msra.gmra.mxu1 %v112_v31  ;;  %3613 = vmatpush3.bf16.msra.mxu0 %v3935_v36 }
  0xfe   :  { %v3321_v17 = vpop.f32.mrf.mxu0  ;;  %3635 = vmatpush3.bf16.msra.mxu1 %v3936_v37  ;;  %3614 = vmatprep.subr.bf16.mxu0 %v3937_v40 }
  0xff   :  { %v3343_v18 = vpop.f32.mrf.mxu1  ;;  %v3322_v20 = vadd.f32 %v3321_v17, %v3320_v13  ;;  %3636 = vmatprep.subr.bf16.mxu1 %v3938_v41  ;;  %v115_v13 = vpack.c.bf16 %v83_v10, %v83_v10 }
 0x100   :  { %v3344_v21 = vadd.f32 %v3343_v18, %v3342_v14  ;;  %v3323_v25 = vpop.f32.mrf.mxu0  ;;  %v85_v14 = vld [vmem:[#allocation2 + $0xf8] sm:$0xff] }
 0x101   :  { %v3345_v26 = vpop.f32.mrf.mxu1  ;;  %v2208_v39 = vadd.f32 %v3322_v20, %v3032_v38  ;;  %3615 = vmatpush3.bf16.msra.mxu0 %v3939_v43  ;;  %v117_v19 = vpack.c.bf16 %v85_v14, %v85_v14  ;;  %v114_v20 = vpack.c.bf16 %v82_v15, %v82_v15  ;;  %2765 = vmatprep.mubr.bf16.mxu0 %v115_v13 }
 0x102   :  { %v3324_v33 = vpop.f32.mrf.mxu0  ;;  %3637 = vmatpush3.bf16.msra.mxu1 %v3940_v44  ;;  %3616 = vmatprep.subr.bf16.mxu0 %v3941_v45 }
 0x103   :  { %v3346_v34 = vpop.f32.mrf.mxu1  ;;  %v4103_v42 = vadd.f32 %v3344_v21, %v2208_v39  ;;  %3638 = vmatprep.subr.bf16.mxu1 %v3942_v46  ;;  %v116_v21 = vpack.c.bf16 %v84_v16, %v84_v16  ;;  %2805 = vmatprep.mubr.bf16.mxu1 %v117_v19 }
 0x105   :  { %3617 = vmatpush3.bf16.msra.mxu0 %v3943_v47 }
 0x106   :  { %3639 = vmatpush3.bf16.msra.mxu1 %v3944_v48  ;;  %3618 = vmatprep.subr.bf16.mxu0 %v3945_v49  ;;  %v3965_v49 = vld [vmem:[%s4168_s3 + $0x38] sm:$0xff]  }
 0x107   :  { %3640 = vmatprep.subr.bf16.mxu1 %v3946_v50  ;;  %v4051_v50 = vmov 0.0  }
 0x109   :  { %3619 = vmatpush3.bf16.msra.mxu0 %v3947_v51  ;;  %v3966_v51 = vld [vmem:[%s4168_s3 + $0x30] sm:$0xff]  }
 0x10a   :  { %3641 = vmatpush3.bf16.msra.mxu1 %v3948_v52  ;;  %3620 = vmatprep.subr.bf16.mxu0 %v3949_v53  ;;  %v3967_v52 = vld [vmem:[%s4168_s3 + $0x28] sm:$0xff]   ;;  %v3968_v53 = vld [vmem:[%s4168_s3 + $0x20] sm:$0xff]  }
 0x10b   :  { %3642 = vmatprep.subr.bf16.mxu1 %v3950_v54 }
 0x10d   :  { %3621 = vmatpush3.bf16.msra.mxu0 %v3951_v55 }
 0x10e   :  { %3643 = vmatpush3.bf16.msra.mxu1 %v3952_v56  ;;  %3622 = vmatprep.subr.bf16.mxu0 %v3953_v57  ;;  %v3969_v56 = vld [vmem:[%s4168_s3 + $0x18] sm:$0xff]  }
 0x10f   :  { %3644 = vmatprep.subr.bf16.mxu1 %v3954_v58 }
 0x111   :  { %3623 = vmatpush3.bf16.msra.mxu0 %v3955_v59 }
 0x112   :  { %3645 = vmatpush3.bf16.msra.mxu1 %v3956_v60  ;;  %3624 = vmatprep.subr.bf16.mxu0 %v3957_v61  ;;  %v3970_v60 = vld [vmem:[%s4168_s3 + $0x10] sm:$0xff]  }
 0x113   :  { %3646 = vmatprep.subr.bf16.mxu1 %v3958_v62 }
 0x115   :  { %3625 = vmatpush3.bf16.msra.mxu0 %v3959_v63 }
 0x116   :  { %3647 = vmatpush3.bf16.msra.mxu1 %v3960_v0  ;;  %3626 = vmatprep.subr.bf16.mxu0 %v3961_v2 }
 0x117   :  { %3648 = vmatprep.subr.bf16.mxu1 %v3962_v4  ;;  %v3971_v4 = vld [vmem:[%s4168_s3 + $0x8] sm:$0xff]  }
 0x119   :  { %3627 = vmatpush3.bf16.msra.mxu0 %v3963_v6  ;;  %v3973_v6 = vld [vmem:[%s4170_s5 + $0x18] sm:$0xff]  }
 0x11a   :  { %3649 = vmatpush3.bf16.msra.mxu1 %v3964_v9  ;;  %3670 = vmatprep.subr.bf16.mxu0 %v4051_v50 }
 0x11b   :  { %3690 = vmatprep.subr.bf16.mxu1 %v4051_v50 }
 0x11c   :  { %v3364_v1 = vpop.f32.mrf.mxu0  ;;  %2766 = vmatmul.mubr.bf16.vlgmr.msra.gmra.mxu0 %v114_v20 }
 0x11d   :  { %v3386_v3 = vpop.f32.mrf.mxu1  ;;  %2806 = vmatmul.mubr.bf16.vlgmr.msra.gmra.mxu1 %v116_v21  ;;  %3671 = vmatpush3.bf16.msra.mxu0 %v3965_v49 }
 0x11e   :  { %v3365_v5 = vpop.f32.mrf.mxu0  ;;  %3672 = vmatprep.subr.bf16.mxu0 %v4051_v50  ;;  %3686 = vmatprep.mubr.msk.bf16.mxu0 %vm4052_vm0, %v4051_v50 }
 0x11f   :  { %v3366_v7 = vadd.f32 %v3365_v5, %v3364_v1  ;;  %v3387_v8 = vpop.f32.mrf.mxu1  ;;  %3698 = vmatprep.mubr.msk.bf16.mxu1 %vm4052_vm0, %v4051_v50  ;;  %v3972_v5 = vld [vmem:[%s4168_s3] sm:$0xff]   ;;  %3691 = vmatpush3.bf16.msra.mxu1 %v3973_v6 }
 0x120   :  { %v3388_v11 = vadd.f32 %v3387_v8, %v3386_v3  ;;  %v3367_v12 = vpop.f32.mrf.mxu0  ;;  %3692 = vmatprep.subr.bf16.mxu1 %v4051_v50 }
 0x121   :  { %v2288_v17 = vadd.f32 %v3366_v7, %v4103_v42  ;;  %v3389_v18 = vpop.f32.mrf.mxu1  ;;  %3673 = vmatpush3.bf16.msra.mxu0 %v3966_v51  ;;  %v3974_v7 = vld [vmem:[%s4170_s5 + $0x10] sm:$0xff]   ;;  %v3975_v51 = vld [vmem:[%s4170_s5 + $0x8] sm:$0xff]  }
 0x122   :  { %v3368_v22 = vpop.f32.mrf.mxu0  ;;  %3674 = vmatprep.subr.bf16.mxu0 %v4051_v50 }
 0x123   :  { %v2328_v23 = vadd.f32 %v3388_v11, %v2288_v17  ;;  %v3390_v24 = vpop.f32.mrf.mxu1  ;;  %3693 = vmatpush3.bf16.msra.mxu1 %v3974_v7 }
 0x124   :  { %3694 = vmatprep.subr.bf16.mxu1 %v4051_v50 }
 0x125   :  { %3675 = vmatpush3.bf16.msra.mxu0 %v3967_v52  ;;  %v3976_v52 = vld [vmem:[%s4170_s5] sm:$0xff]   ;;  %s3022_s5 = sshll.u32 %s4053_s13, 4  ;;  %s3023_s5 = int_to_ptr.vmem [resolvable:$true] %s3022_s5 }
 0x126   :  { %3676 = vmatprep.subr.bf16.mxu0 %v4051_v50  ;;  %p4026_p11 = scmp.lt.s32.totalorder %s3023_s5, %s3023_s5 }
 0x127   :  { %3695 = vmatpush3.bf16.msra.mxu1 %v3975_v51 }
 0x128   :  { %3696 = vmatprep.subr.bf16.mxu1 %v4051_v50 }
 0x129   :  { %3677 = vmatpush3.bf16.msra.mxu0 %v3968_v53  ;;  %v3289_v53 = vld [vmem:[%s4169_s4] ss:$0 sm:$0xff]  ;;  %s4021_s4 = scalar_lea.vmem %s3023_s5, 128 }
 0x12a   :  { %3678 = vmatprep.subr.bf16.mxu0 %v4051_v50  ;;  %p4022_p10 = scmp.ne.s32.totalorder %s3023_s5, %s4021_s4  ;;  %p4027_p12 = scmp.lt.s32.totalorder %s4021_s4, %s4021_s4 }
 0x12b   :  { %3697 = vmatpush3.bf16.msra.mxu1 %v3976_v52 }
 0x12c   :  { %p4028_p13 = por %p4027_p12, %p4026_p11 }
 0x12d   :  { %3679 = vmatpush3.bf16.msra.mxu0 %v3969_v56 }
 0x12e   :  { %3680 = vmatprep.subr.bf16.mxu0 %v4051_v50  ;;  %p4029_p0 = pnand %p4028_p13, %p4022_p10 }
 0x131   :  { %3681 = vmatpush3.bf16.msra.mxu0 %v3970_v60 }
 0x132   :  { %3682 = vmatprep.subr.bf16.mxu0 %v4051_v50 }
 0x135   :  { %3683 = vmatpush3.bf16.msra.mxu0 %v3971_v4 }
 0x136   :  { %3684 = vmatprep.subr.bf16.mxu0 %v4051_v50  ;;  %v3298_v50 = vld [vmem:[%s4171_s6] ss:$0 sm:$0xff] }
 0x139   :  { %3685 = vmatpush3.bf16.msra.mxu0 %v3972_v5 }
 0x13c   :  { %v3408_v25 = vpop.f32.mrf.mxu0 }
 0x13d   :  { %v3430_v26 = vpop.f32.mrf.mxu1 }
 0x13e   :  { %v3409_v27 = vpop.f32.mrf.mxu0 }
 0x13f   :  { %v3410_v28 = vadd.f32 %v3409_v27, %v3408_v25  ;;  %v3431_v29 = vpop.f32.mrf.mxu1 }
 0x140   :  { %v3432_v30 = vadd.f32 %v3431_v29, %v3430_v26  ;;  %v3411_v31 = vpop.f32.mrf.mxu0 }
 0x141   :  { %v2368_v32 = vadd.f32 %v3410_v28, %v2328_v23  ;;  %v3433_v33 = vpop.f32.mrf.mxu1 }
 0x142   :  { %v3412_v34 = vpop.f32.mrf.mxu0 }
 0x143   :  { %v2408_v35 = vadd.f32 %v3432_v30, %v2368_v32  ;;  %v3434_v36 = vpop.f32.mrf.mxu1 }
 0x15c   :  { %v3452_v37 = vpop.f32.mrf.mxu0 }
 0x15d   :  { %v3474_v38 = vpop.f32.mrf.mxu1 }
 0x15e   :  { %v3453_v39 = vpop.f32.mrf.mxu0 }
 0x15f   :  { %v3475_v40 = vpop.f32.mrf.mxu1  ;;  %v3454_v41 = vadd.f32 %v3453_v39, %v3452_v37 }
 0x160   :  { %v3476_v42 = vadd.f32 %v3475_v40, %v3474_v38  ;;  %v3455_v43 = vpop.f32.mrf.mxu0 }
 0x161   :  { %v3477_v44 = vpop.f32.mrf.mxu1  ;;  %v2448_v45 = vadd.f32 %v3454_v41, %v2408_v35 }
 0x162   :  { %v3456_v46 = vpop.f32.mrf.mxu0 }
 0x163   :  { %v3478_v47 = vpop.f32.mrf.mxu1  ;;  %v2488_v48 = vadd.f32 %v3476_v42, %v2448_v45 }
 0x17c   :  { %v3496_v54 = vpop.f32.mrf.mxu0 }
 0x17d   :  { %v3518_v55 = vpop.f32.mrf.mxu1 }
 0x17e   :  { %v3497_v57 = vpop.f32.mrf.mxu0 }
 0x17f   :  { %v3498_v58 = vadd.f32 %v3497_v57, %v3496_v54  ;;  %v3519_v59 = vpop.f32.mrf.mxu1 }
 0x180   :  { %v3520_v61 = vadd.f32 %v3519_v59, %v3518_v55  ;;  %v3499_v62 = vpop.f32.mrf.mxu0 }
 0x181   :  { %v2528_v63 = vadd.f32 %v3498_v58, %v2488_v48  ;;  %v3521_v0 = vpop.f32.mrf.mxu1 }
 0x182   :  { %v3500_v1 = vpop.f32.mrf.mxu0 }
 0x183   :  { %v2568_v2 = vadd.f32 %v3520_v61, %v2528_v63  ;;  %v3522_v3 = vpop.f32.mrf.mxu1 }
 0x19c   :  { %v3540_v8 = vpop.f32.mrf.mxu0 }
 0x19d   :  { %v3562_v9 = vpop.f32.mrf.mxu1 }
 0x19e   :  { %v3541_v10 = vpop.f32.mrf.mxu0 }
 0x19f   :  { %v3563_v11 = vpop.f32.mrf.mxu1  ;;  %v3542_v24 = vadd.f32 %v3541_v10, %v3540_v8 }
 0x1a0   :  { %v3543_v12 = vpop.f32.mrf.mxu0  ;;  %v3564_v26 = vadd.f32 %v3563_v11, %v3562_v9 }
 0x1a1   :  { %v3565_v13 = vpop.f32.mrf.mxu1  ;;  %v2608_v25 = vadd.f32 %v3542_v24, %v2568_v2 }
 0x1a2   :  { %v3544_v14 = vpop.f32.mrf.mxu0 }
 0x1a3   :  { %v3566_v15 = vpop.f32.mrf.mxu1  ;;  %v2648_v28 = vadd.f32 %v3564_v26, %v2608_v25 }
 0x1bc   :  { %v3584_v16 = vpop.f32.mrf.mxu0 }
 0x1bd   :  { %v3606_v17 = vpop.f32.mrf.mxu1 }
 0x1be   :  { %v3585_v18 = vpop.f32.mrf.mxu0 }
 0x1bf   :  { %v3607_v19 = vpop.f32.mrf.mxu1  ;;  %v3586_v27 = vadd.f32 %v3585_v18, %v3584_v16 }
 0x1c0   :  { %v3587_v20 = vpop.f32.mrf.mxu0  ;;  %v3608_v30 = vadd.f32 %v3607_v19, %v3606_v17 }
 0x1c1   :  { %v3609_v21 = vpop.f32.mrf.mxu1  ;;  %v2688_v29 = vadd.f32 %v3586_v27, %v2648_v28 }
 0x1c2   :  { %v3588_v22 = vpop.f32.mrf.mxu0 }
 0x1c3   :  { %v3610_v23 = vpop.f32.mrf.mxu1  ;;  %v2728_v34 = vadd.f32 %v3608_v30, %v2688_v29 }
 0x1dc   :  { %v3628_v31 = vpop.f32.mrf.mxu0 }
 0x1dd   :  { %v3650_v32 = vpop.f32.mrf.mxu1 }
 0x1de   :  { %v3629_v33 = vpop.f32.mrf.mxu0 }
 0x1df   :  { %v3630_v35 = vadd.f32 %v3629_v33, %v3628_v31  ;;  %v3651_v36 = vpop.f32.mrf.mxu1 }
 0x1e0   :  { %v3631_v37 = vpop.f32.mrf.mxu0  ;;  %v3652_v39 = vadd.f32 %v3651_v36, %v3650_v32 }
 0x1e1   :  { %v2768_v38 = vadd.f32 %v3630_v35, %v2728_v34  ;;  %v3653_v40 = vpop.f32.mrf.mxu1 }
 0x1e2   :  { %v3632_v41 = vpop.f32.mrf.mxu0 }
 0x1e3   :  { %v2808_v42 = vadd.f32 %v3652_v39, %v2768_v38  ;;  %v3654_v43 = vpop.f32.mrf.mxu1 }
 0x1e5   :  { %v2813_v44 = vsub.f32 0.0, %v2808_v42 }
 0x1e7   :  { %v2814_v45 = vmul.f32 1.442695, %v2813_v44 }
 0x1e9   :  { %3977 = vpow2.f32 %v2814_v45 }
 0x1f6   :  { %v3978_v46 = vpop.eup %3977 }
 0x1f7   :  { %v2816_v47 = vadd.f32 1.0, %v3978_v46 }
 0x1f9   :  { %3979 = vrcp.f32 %v2816_v47 }
 0x206   :  { %v3980_v48 = vpop.eup %3979 }
 0x207   :  { %v2818_v49 = vpack.c.bf16 %v3980_v48, %v3980_v48 }
 0x209   :  { %3687 = vmatmul.mubr.bf16.vlgmr.msra.gmra.mxu0 %v2818_v49 }
 0x2c9   :  { %v2924_v54 = vpop.f32.mrf.mxu0 }
 0x2ca   :  { %v2925_v55 = vadd.f32 %v3289_v53, %v2924_v54 }
 0x2cb   :  { %v3688_v56 = vpop.f32.mrf.mxu0 }
 0x2cc   :  { %v2930_v57 = vmax.f32 %v2925_v55, 0.0 }
 0x2cd   :  { %v2927_v58 = vpop.f32.mrf.mxu0 }
 0x2ce   :  { %v2931_v59 = vpack.c.bf16 %v2930_v57, %v2930_v57 }
 0x2cf   :  { %v3689_v60 = vpop.f32.mrf.mxu0 }
 0x2d0   :  { %3699 = vmatmul.mubr.msk.bf16.vlgmr.msra.gmra.mxu1 %vm2971_vm1, %v2931_v59 }
 0x390   :  { %v3009_v61 = vpop.f32.mrf.mxu1 }
 0x391   :  { %v3010_v62 = vadd.f32 %v3298_v50, %v3009_v61 }
 0x392   :  { %v3700_v63 = vpop.f32.mrf.mxu1 }
 0x393   :  { %3015 = vst [vmem:[#allocation7] sm:$0xff] %v3010_v62 }
 0x394   :  { %v3012_v0 = vpop.f32.mrf.mxu1 }
 0x395   :  { %4032 = shalt.err (!%p4029_p0)
}
 0x396   :  { %3025 = dma.vmem_to_hbm [thread:$0]  %s3023_s5, 128, %s4172_s7, [#allocation4]   ;;  %v3701_v1 = vpop.f32.mrf.mxu1 }
 0x397   :  { %4045 = dma.done.wait [#allocation4], 128  }
 0x398   :  { %4046 = vsyncadd [#allocation4], 4294967168 }
 0x399   :  { %3029 = vsyncpa [#allocation3], 1 }
 0x39a   :  { %3030 = vsyncpa [#allocation6], 1 }
 0x39b   :  { %3031 = vsyncpa [#allocation4], 1 }

</bundles_post_ra>
